<compile_context>
chip_gen: v5e
topology: v5e:2x2
jax: 0.10.0
libtpu: 0.0.40
codegen_flags: <defaults>
</compile_context>

<pallas_src>
import functools

import jax
import jax.numpy as jnp
from jax.experimental import pallas as pl
from jax.experimental.pallas import tpu as pltpu

_NUM_COORDS = 12      # 6 springs x 2 components
_LANE = 128
_MAX_TB = 8192        # VMEM cap: ~24 MiB double-buffered at this tile (see header)
_MIN_GRID_STEPS = 8   # >= 2 steps per v7x TensorCore, amortizes ~0.35 us step cost


def spring_kernel(w_ref, x_ref, force_ref, energy_ref):
    # w_ref:      VMEM (12, 3) resident weights (constant index_map):
    #               cols 0..1 -> Wf[2i+j, j] = k * w_i        (force)
    #               col  2    -> we[2i+j]    = 0.5 * k * w_i  (energy)
    # x_ref:      VMEM (TB, 12) batch-major tile (batch on sublanes, coords on lanes)
    # force_ref:  VMEM (TB, 2)
    # energy_ref: VMEM (TB, 1)
    x = x_ref[...]
    w = w_ref[...]
    # force = k * sum_i w_i * x[:, 2i:2i+2]  ==  x @ Wf  (MXU; kernel is DMA-bound)
    force_ref[...] = jnp.dot(x, w[:, 0:2], preferred_element_type=jnp.float32)
    # energy = 0.5 * k * sum_j w_rep[j] * x[:, j]^2  ==  (x*x) @ we
    energy_ref[...] = jnp.dot(x * x, w[:, 2:3], preferred_element_type=jnp.float32)


def _pick_tile(batch):
    """Largest 128-aligned batch tile that keeps the grid >= _MIN_GRID_STEPS
    steps (when the batch allows it) and stays under the VMEM cap."""
    per_step = -(-batch // _MIN_GRID_STEPS)            # cdiv
    tb = max(_LANE, (per_step // _LANE) * _LANE)
    return min(tb, _MAX_TB)


@functools.partial(jax.jit, static_argnames=("tb",))
def spring_forward_pallas(params, x, *, tb=None):
    """params: (7,) f32 = [k, w1..w6]; x: (B, 12) f32 -> force (B, 2), energy (B, 1)."""
    B, D = x.shape
    assert D == _NUM_COORDS
    if tb is None:
        tb = _pick_tile(B)
    assert tb % 8 == 0

    k = params[0].astype(jnp.float32)
    w6 = params[1:].astype(jnp.float32)                            # w1..w6
    w_rep = jnp.repeat(w6, 2)                                      # (12,) = [w1,w1,...,w6,w6]
    sel = jnp.tile(jnp.eye(2, dtype=jnp.float32), (6, 1))          # (12, 2): sel[2i+j, j] = 1
    wf = (k * w_rep)[:, None] * sel                                # (12, 2) force matrix
    we = (0.5 * k * w_rep)[:, None]                                # (12, 1) energy column
    w = jnp.concatenate([wf, we], axis=1)                          # (12, 3) fused weights

    x = x.astype(jnp.float32)
    grid = (pl.cdiv(B, tb),)                                       # ragged last block is OK

    force, energy = pl.pallas_call(
        spring_kernel,
        out_shape=(
            jax.ShapeDtypeStruct((B, 2), jnp.float32),
            jax.ShapeDtypeStruct((B, 1), jnp.float32),
        ),
        grid_spec=pltpu.PrefetchScalarGridSpec(
            num_scalar_prefetch=0,
            grid=grid,
            in_specs=[
                pl.BlockSpec((_NUM_COORDS, 3), lambda i: (0, 0)),     # resident weights
                pl.BlockSpec((tb, _NUM_COORDS), lambda i: (i, 0)),    # contiguous x tile
            ],
            out_specs=(
                pl.BlockSpec((tb, 2), lambda i: (i, 0)),
                pl.BlockSpec((tb, 1), lambda i: (i, 0)),
            ),
        ),
        compiler_params=pltpu.CompilerParams(
            dimension_semantics=("parallel",),         # megacore split on v7x
            vmem_limit_bytes=32 * 1024 * 1024,         # covers lane-padded tiles at tb=8192
        ),
        cost_estimate=pl.CostEstimate(
            flops=60 * B,
            transcendentals=0,
            bytes_accessed=60 * B + 144,               # 48 in + 12 out per row + weights
        ),
    )(w, x)
    return force, energy


def spring_reference(params, x):
    """Pure-JAX reference mirroring the PyTorch forward exactly."""
    k = params[0]
    w = params[1:]                                                  # w1..w6
    force = k * sum(w[i] * x[:, 2 * i:2 * i + 2] for i in range(6))
    energy = 0.5 * k * sum(
        jnp.sum(w[i] * x[:, 2 * i:2 * i + 2] ** 2, axis=1) for i in range(6)
    )
    return force, energy.reshape((-1, 1))


def spring_forward(params, x, *, tb=None, min_kernel_batch=65536):
    """Dispatcher: below ~64K rows the pallas_call fixed cost dominates the
    ~60 B/row of useful HBM traffic, so use the fused pure-JAX path there."""
    if x.shape[0] < min_kernel_batch:
        return spring_reference(params, x)
    return spring_forward_pallas(params, x, tb=tb)


if __name__ == "__main__":
    key = jax.random.PRNGKey(0)
    k_params, k_x = jax.random.split(key)

    # Deterministic parameter init (torch.rand -> uniform [0, 1)).
    params = jax.random.uniform(k_params, (7,), dtype=jnp.float32)

    # Small batch, deliberately NOT a tile multiple -> exercises the ragged
    # (masked) last block.  Auto tile -> tb=128, grid=(8,).
    B = 1000
    x = jax.random.uniform(k_x, (B, 12), dtype=jnp.float32)

    # Run the Pallas kernel path directly (the dispatcher would take the
    # small-batch pure-JAX fast path at this size).
    force, energy = spring_forward_pallas(params, x)
    jax.block_until_ready((force, energy))

    force_ref, energy_ref = spring_reference(params, x)
    assert force.shape == (B, 2) and energy.shape == (B, 1)
    assert jnp.allclose(force, force_ref, atol=1e-5, rtol=1e-5)
    assert jnp.allclose(energy, energy_ref, atol=1e-5, rtol=1e-5)

    # Dispatcher sanity check (takes the pure-JAX fast path at this batch size).
    force2, energy2 = spring_forward(params, x)
    assert jnp.allclose(force2, force_ref, atol=1e-5, rtol=1e-5)
    assert jnp.allclose(energy2, energy_ref, atol=1e-5, rtol=1e-5)

    print("KERNEL_OK")
</pallas_src>

<mosaic_0001>
module attributes {stable_mosaic.version = 11 : i64} {
  func.func @spring_kernel(%arg0: i32, %arg1: memref<12x3xf32, #tpu.memory_space<vmem>>, %arg2: memref<128x12xf32, #tpu.memory_space<vmem>>, %arg3: memref<128x2xf32, #tpu.memory_space<vmem>>, %arg4: memref<128x1xf32, #tpu.memory_space<vmem>>) attributes {dimension_semantics = [#tpu.dimension_semantics<parallel>], iteration_bounds = array<i64: 8>, scalar_prefetch = 0 : i64, scratch_operands = 0 : i64, tpu.core_type = #tpu.core_type<tc>, window_params = [{pipeline_mode = #tpu.pipeline_mode<synchronous>, transform_indices = @transform_0, window_bounds = array<i64: 12, 3>}, {transform_indices = @transform_1, window_bounds = array<i64: 128, 12>}, {transform_indices = @transform_2, window_bounds = array<i64: 128, 2>}, {transform_indices = @transform_3, window_bounds = array<i64: 128, 1>}]} {
    %c0 = arith.constant 0 : index
    %c0_0 = arith.constant 0 : index
    %0 = vector.load %arg2[%c0, %c0_0] : memref<128x12xf32, #tpu.memory_space<vmem>>, vector<128x12xf32>
    %c0_1 = arith.constant 0 : index
    %c0_2 = arith.constant 0 : index
    %1 = vector.load %arg1[%c0_1, %c0_2] : memref<12x3xf32, #tpu.memory_space<vmem>>, vector<12x3xf32>
    %2 = vector.extract_strided_slice %1 {offsets = [0, 0], sizes = [12, 2], strides = [1, 1]} : vector<12x3xf32> to vector<12x2xf32>
    %cst = arith.constant dense<0.000000e+00> : vector<128x2xf32>
    %3 = tpu.matmul %0, %2, %cst {dimension_numbers = #tpu.dot_dimension_numbers<[1], [0], [0], [1], [0, 0, 1, 1], [], []>} : vector<128x12xf32>, vector<12x2xf32>, vector<128x2xf32> -> vector<128x2xf32>
    %c0_3 = arith.constant 0 : index
    %c0_4 = arith.constant 0 : index
    %4 = vector.load %arg3[%c0_3, %c0_4] : memref<128x2xf32, #tpu.memory_space<vmem>>, vector<128x2xf32>
    tpu.vector_store %arg3[%c0_3, %c0_4], %3 {strides = array<i32>} : memref<128x2xf32, #tpu.memory_space<vmem>>, vector<128x2xf32>,
    %5 = arith.mulf %0, %0 : vector<128x12xf32>
    %6 = vector.extract_strided_slice %1 {offsets = [0, 2], sizes = [12, 1], strides = [1, 1]} : vector<12x3xf32> to vector<12x1xf32>
    %cst_5 = arith.constant dense<0.000000e+00> : vector<128x1xf32>
    %7 = tpu.matmul %5, %6, %cst_5 {dimension_numbers = #tpu.dot_dimension_numbers<[1], [0], [0], [1], [0, 0, 1, 1], [], []>} : vector<128x12xf32>, vector<12x1xf32>, vector<128x1xf32> -> vector<128x1xf32>
    %c0_6 = arith.constant 0 : index
    %c0_7 = arith.constant 0 : index
    %8 = vector.load %arg4[%c0_6, %c0_7] : memref<128x1xf32, #tpu.memory_space<vmem>>, vector<128x1xf32>
    tpu.vector_store %arg4[%c0_6, %c0_7], %7 {strides = array<i32>} : memref<128x1xf32, #tpu.memory_space<vmem>>, vector<128x1xf32>,
    return
  }
  func.func @transform_0(%arg0: i32) -> (i32, i32) {
    %c0_i32 = arith.constant 0 : i32
    %c0_i32_0 = arith.constant 0 : i32
    %c0_i32_1 = arith.constant 0 : i32
    return %c0_i32, %c0_i32_0 : i32, i32
  }
  func.func @transform_1(%arg0: i32) -> (i32, i32) {
    %c0_i32 = arith.constant 0 : i32
    %c0_i32_0 = arith.constant 0 : i32
    return %arg0, %c0_i32 : i32, i32
  }
  func.func @transform_2(%arg0: i32) -> (i32, i32) {
    %c0_i32 = arith.constant 0 : i32
    %c0_i32_0 = arith.constant 0 : i32
    return %arg0, %c0_i32 : i32, i32
  }
  func.func @transform_3(%arg0: i32) -> (i32, i32) {
    %c0_i32 = arith.constant 0 : i32
    %c0_i32_0 = arith.constant 0 : i32
    return %arg0, %c0_i32 : i32, i32
  }
}

</mosaic_0001>

<bundles_post_ra>
// kernel: tile.9
= control target key start
LH: loop header
LB: loop body
LE: loop exit
PB: predicated region body
PF: predicated region fallthrough
CT: control target
= control target key end

     0   :  { %s7_s6 = smov 3  ;;  %s21_s9 = smov 3  ;;  %vm4_vm0 = vcmask 15360   ;;  %vm11_vm1 = vcmask 97360   ;;  %vm18_vm2 = vcmask 80960   ;;  %vm25_vm3 = vcmask 64560   ;;  %s93_s0 = inlined_call_operand.vmem [shape: f32[6,2,2], index: 0, kind: input, shape index: {}]   ;;  %s94_s1 = inlined_call_operand.vmem [shape: f32[12,2], index: 1, kind: output, shape index: {}]  }
   0x1   :  { %v47_v0 = vld [vmem:[%s93_s0 + $0x5] ss:$8 sm:%s7_s6]   ;;  %s57_s10 = smov 10   ;;  %v49_v1 = vld [vmem:[%s93_s0 + $0x3] ss:$8 sm:%s21_s9]   ;;  %s58_s13 = smov 6  }
   0x2   :  { %9 = vrot.lane.b32.xlu0 %v47_v0, %s57_s10  ;;  %23 = vrot.lane.b32.xlu1 %v49_v1, %s58_s13  ;;  %s14_s14 = smov 3  ;;  %s35_s15 = smov 3  ;;  %vm32_vm4 = vcmask 48160   ;;  %vm39_vm5 = vcmask 31760  }
   0x3   :  { %s28_s16 = smov 3  ;;  %v51_v2 = vld [vmem:[%s93_s0 + $0x1] ss:$8 sm:%s35_s15]   ;;  %s59_s19 = smov 2   ;;  %v48_v3 = vld [vmem:[%s93_s0 + $0x4] ss:$8 sm:%s14_s14]  }
   0x4   :  { %37 = vrot.lane.b32.xlu2 %v51_v2, %s59_s19  ;;  %v50_v4 = vld [vmem:[%s93_s0 + $0x2] ss:$8 sm:%s28_s16]   ;;  %s60_s24 = smov 8   ;;  %s61_s25 = smov 4  }
   0x5   :  { %s2_s26 = smov 3 }
   0x6   :  { %v3_v5 = vld [vmem:[%s93_s0] ss:$8 sm:%s2_s26]  }
   0x7   :  { %5 = vst.msk [vmem:[#allocation0] sm:$0x3] %vm4_vm0, %v3_v5  }
   0xa   :  { %16 = vrot.lane.b32.xlu0 %v48_v3, %s60_s24  ;;  %30 = vrot.lane.b32.xlu1 %v50_v4, %s61_s25 }
  0x5e   :  { %v38_v6 = vpop.permute.xlu2 %37  }
  0x74   :  { %v10_v7 = vpop.permute.xlu0 %9   ;;  %v24_v8 = vpop.permute.xlu1 %23  }
  0x75   :  { %12 = vst.msk [vmem:[#allocation0] sm:$0x3] %vm11_vm1, %v10_v7  }
  0x7c   :  { %v17_v9 = vpop.permute.xlu0 %16   ;;  %v31_v10 = vpop.permute.xlu1 %30  }
  0x7d   :  { %19 = vst.msk [vmem:[#allocation0] sm:$0x3] %vm18_vm2, %v17_v9  }
  0x7e   :  { %26 = vst.msk [vmem:[#allocation0] sm:$0x3] %vm25_vm3, %v24_v8  }
  0x7f   :  { %33 = vst.msk [vmem:[#allocation0] sm:$0x3] %vm32_vm4, %v31_v10  }
  0x80   :  { %40 = vst.msk [vmem:[#allocation0] sm:$0x3] %vm39_vm5, %v38_v6  }
  0x87   :  { %v43_v11 = vld [vmem:[#allocation0] sm:$0x3] }
  0x88   :  { %46 = vst [vmem:[%s94_s1] sm:$0x3] %v43_v11 }

// kernel: spring_forward_pallas.1
= control target key start
LH: loop header
LB: loop body
LE: loop exit
PB: predicated region body
PF: predicated region fallthrough
CT: control target
= control target key end

     0   :  { %s1450_s12 = smov 0   ;;  %s1452_s13 = smov 0   ;;  %s1814_s0 = inlined_call_operand.vmem [shape: f32[12,3], index: 0, kind: input, shape index: {}]   ;;  %s1815_s1 = inlined_call_operand.vmem [shape: f32[1000,12], index: 1, kind: input, shape index: {}]   ;;  %s1816_s2 = inlined_call_operand.vmem [shape: f32[1000,2], index: 2, kind: output, shape index: {0}]   ;;  %s1817_s3 = inlined_call_operand.vmem [shape: f32[1000,1], index: 3, kind: output, shape index: {1}]  }
   0x1   :  { %s1454_s14 = smov 0  }
   0x2 LB: > { %s1463_s15 = sadd.s32 4294967295, %s1363_s14   ;;  %s1465_s16 = sadd.s32 1, %s1363_s14   ;;  %s1363_s14 = sphi %s1454_s14, %s1831_s14   ;;  %s1359_s13 = sphi %s1452_s13, %s1830_s13   ;;  %s1355_s12 = sphi %s1450_s12, %s1829_s12  }
   0x3   : > { %s65_s17 = ssub.s32 %s1363_s14, %s1465_s16  ;;  %s68_s18 = sadd.s32 1, %s1359_s13 }
   0x4   : > { %p66_p0 = scmp.eq.s32.totalorder %s65_s17, 0  ;;  %p78_p1 = scmp.ne.s32.totalorder %s1359_s13, %s1355_s12 }
   0x5   : > { %p79_p2 = scmp.eq.s32.totalorder %s1463_s15, 7  ;;  %p1043_p3 = scmp.ge.s32.totalorder %s1363_s14, 1 }
   0x6   : > { %s1473_s19 = scalar_select %p66_p0, %s1359_s13, %s68_s18  }
   0x7   : > { %p1475_p4 = por %p79_p2, %p78_p1  ;;  %p149_p5 = scmp.lt.s32.totalorder %s1363_s14, 9 }
   0x9   : > { %p150_p6 = pnand %p1043_p3, %p149_p5 }
   0xa   : > { %s1429_s23 = smov (!%p150_p6), 126   ;;  %s1486_s26 = sshll.u32 (!%p150_p6), %s1463_s15, 4 }
   0xb   : > { %153 = sbr.rel (%p150_p6) target bundleno = 431 (0x1af), region = 28  ;;  %p185_p7 = scmp.lt.s32.totalorder (!%p150_p6), %s1486_s26, 124 }
   0xc   : > { %s171_s5 = sand.u32 (!%p150_p6), 1, %s1355_s12  }
   0xd   : > { %s1044_s6 = sshll.u32 (!%p150_p6), %s171_s5, 7 }
   0xe   : > { %s1548_s7 = scalar_lea.vmem (!%p150_p6), [#allocation2], %s1044_s6   ;;  %s1566_s8 = scalar_lea.vmem (!%p150_p6), [#allocation3], %s1044_s6  }
  0x10   : > { %v221_v0 = vld [vmem:[%s1814_s0 + $0x8] sm:$0xf]  ;;  %v220_v1 = vld [vmem:[%s1814_s0] sm:$0xff]  ;;  %s186_s27 = scalar_select %p185_p7, %s1486_s26, 124  ;;  %vm271_vm0 = vcmask 1043456   ;;  %vm222_vm1 = vcmask 97280  }
  0x11   : > { %376 = vrot.lane.b32.xlu0 %v221_v0, %s1429_s23  ;;  %1120 = vmatpush.msk.msra.mxu2 %vm271_vm0, %v221_v0  ;;  %vm340_vm2 = vcmask 15360   ;;  %vm494_vm3 = vcmask 7168   ;;  %s523_s9 = ssub.s32 (%p1475_p4), 125, %s1486_s26  ;;  %s1114_s10 = sshll.u32 (%p1475_p4), %s1463_s15, 7 }
  0x12   : > { %1048 = vmatpush.msk.msra.mxu0 %vm271_vm0, %v221_v0  ;;  %s1047_s28 = sshll.u32 %s186_s27, 3  ;;  %p524_p8 = scmp.lt.s32.totalorder (%p1475_p4), %s523_s9, 16 }
  0x13   : > { %1121 = vmatpush.msra.mxu2 %v220_v1  ;;  %s1495_s4 = scalar_lea.vmem %s1815_s1, %s1047_s28  ;;  %s1623_s14 = scalar_lea.vmem (%p1475_p4), %s1816_s2, %s1114_s10  }
  0x14   : > { %290 = vmatpush.msra.mxu0 %v220_v1  ;;  %v212_v2 = vld [vmem:[%s1495_s4 + $0x40] sm:$0xff]  ;;  %v213_v4 = vld [vmem:[%s1495_s4 + $0x48] sm:$0xff]  ;;  %v214_v6 = vld [vmem:[%s1495_s4 + $0x50] sm:$0xff] }
  0x15   : > { %1057 = vmatmul.msk.f32.vlgmr.msra.gmra.mxu2 %vm222_vm1, %v212_v2  ;;  %v204_v3 = vld [vmem:[%s1495_s4] sm:$0xff]  ;;  %v205_v5 = vld [vmem:[%s1495_s4 + $0x8] sm:$0xff]  ;;  %v206_v7 = vld [vmem:[%s1495_s4 + $0x10] sm:$0xff]  ;;  %v365_v11 = vmul.f32 %v212_v2, %v212_v2  ;;  %v366_v16 = vmul.f32 %v213_v4, %v213_v4  ;;  %v367_v20 = vmul.f32 %v214_v6, %v214_v6 }
  0x16   : > { %1049 = vmatmul.msk.f32.vlgmr.msra.gmra.mxu0 %vm222_vm1, %v204_v3  ;;  %v215_v9 = vld [vmem:[%s1495_s4 + $0x58] sm:$0xff]  ;;  %v357_v12 = vmul.f32 %v204_v3, %v204_v3  ;;  %v216_v14 = vld [vmem:[%s1495_s4 + $0x60] sm:$0xff]  ;;  %v358_v17 = vmul.f32 %v205_v5, %v205_v5  ;;  %v217_v18 = vld [vmem:[%s1495_s4 + $0x68] sm:$0xff]  ;;  %v359_v21 = vmul.f32 %v206_v7, %v206_v7 }
  0x17   : > { %v207_v10 = vld [vmem:[%s1495_s4 + $0x18] sm:$0xff]  ;;  %v208_v15 = vld [vmem:[%s1495_s4 + $0x20] sm:$0xff]  ;;  %v209_v19 = vld [vmem:[%s1495_s4 + $0x28] sm:$0xff]  ;;  %v368_v24 = vmul.f32 %v215_v9, %v215_v9  ;;  %v369_v28 = vmul.f32 %v216_v14, %v216_v14  ;;  %v370_v30 = vmul.f32 %v217_v18, %v217_v18 }
  0x18   : > { %v218_v22 = vld [vmem:[%s1495_s4 + $0x70] sm:$0xff]  ;;  %v360_v25 = vmul.f32 %v207_v10, %v207_v10  ;;  %v219_v26 = vld [vmem:[%s1495_s4 + $0x78] sm:$0xff]  ;;  %v361_v29 = vmul.f32 %v208_v15, %v208_v15  ;;  %v362_v31 = vmul.f32 %v209_v19, %v209_v19 }
  0x19   : > { %374 = vrot.lane.b32.xlu0 %v220_v1, %s1429_s23  ;;  %v210_v23 = vld [vmem:[%s1495_s4 + $0x30] sm:$0xff]  ;;  %v211_v27 = vld [vmem:[%s1495_s4 + $0x38] sm:$0xff]  ;;  %v371_v32 = vmul.f32 %v218_v22, %v218_v22  ;;  %v372_v34 = vmul.f32 %v219_v26, %v219_v26 }
  0x1a   : > { %v363_v33 = vmul.f32 %v210_v23, %v210_v23  ;;  %v364_v35 = vmul.f32 %v211_v27, %v211_v27 }
  0x1d   : > { %1058 = vmatmul.msk.f32.gmra.mxu2 %vm222_vm1, %v213_v4 }
  0x1e   : > { %1050 = vmatmul.msk.f32.gmra.mxu0 %vm222_vm1, %v205_v5 }
  0x25   : > { %1059 = vmatmul.msk.f32.gmra.mxu2 %vm222_vm1, %v214_v6 }
  0x26   : > { %1051 = vmatmul.msk.f32.gmra.mxu0 %vm222_vm1, %v206_v7 }
  0x2d   : > { %1060 = vmatmul.msk.f32.gmra.mxu2 %vm222_vm1, %v215_v9 }
  0x2e   : > { %1052 = vmatmul.msk.f32.gmra.mxu0 %vm222_vm1, %v207_v10 }
  0x35   : > { %1061 = vmatmul.msk.f32.gmra.mxu2 %vm222_vm1, %v216_v14 }
  0x36   : > { %1053 = vmatmul.msk.f32.gmra.mxu0 %vm222_vm1, %v208_v15 }
  0x3d   : > { %1062 = vmatmul.msk.f32.gmra.mxu2 %vm222_vm1, %v217_v18 }
  0x3e   : > { %1054 = vmatmul.msk.f32.gmra.mxu0 %vm222_vm1, %v209_v19 }
  0x45   : > { %1063 = vmatmul.msk.f32.gmra.mxu2 %vm222_vm1, %v218_v22 }
  0x46   : > { %1055 = vmatmul.msk.f32.gmra.mxu0 %vm222_vm1, %v210_v23 }
  0x4d   : > { %1064 = vmatmul.msk.f32.gmra.mxu2 %vm222_vm1, %v219_v26 }
  0x4e   : > { %1056 = vmatmul.msk.f32.gmra.mxu0 %vm222_vm1, %v211_v27 }
  0x83   : > { %v377_v8 = vpop.permute.xlu0 %376 }
  0x84   : > { %1065 = vmatpush.msk.msra.mxu1 %vm271_vm0, %v377_v8  ;;  %1122 = vmatpush.msk.msra.mxu3 %vm271_vm0, %v377_v8 }
  0x8b   : > { %v375_v13 = vpop.permute.xlu0 %374 }
  0x8c   : > { %444 = vmatpush.msra.mxu1 %v375_v13  ;;  %1123 = vmatpush.msra.mxu3 %v375_v13 }
  0x8d   : > { %1074 = vmatmul.msk.f32.vlgmr.msra.gmra.mxu3 %vm222_vm1, %v365_v11  ;;  %1066 = vmatmul.msk.f32.vlgmr.msra.gmra.mxu1 %vm222_vm1, %v357_v12 }
  0x93   : > { %v292_v36 = vpop.f32.mrf.mxu0 }
  0x94   : > { %341 = vst.msk [vmem:[%s1548_s7] sm:$0xff] %vm340_vm2, %v292_v36 }
  0x95   : > { %1075 = vmatmul.msk.f32.gmra.mxu3 %vm222_vm1, %v366_v16  ;;  %1067 = vmatmul.msk.f32.gmra.mxu1 %vm222_vm1, %v358_v17 }
  0x98   : > { %v316_v37 = vpop.f32.mrf.mxu2 }
  0x99   : > { %349 = vst.msk [vmem:[%s1548_s7 + $0x40] sm:$0xff] %vm340_vm2, %v316_v37 }
  0x9b   : > { %v295_v38 = vpop.f32.mrf.mxu0 }
  0x9c   : > { %342 = vst.msk [vmem:[%s1548_s7 + $0x8] sm:$0xff] %vm340_vm2, %v295_v38 }
  0x9d   : > { %1076 = vmatmul.msk.f32.gmra.mxu3 %vm222_vm1, %v367_v20  ;;  %1068 = vmatmul.msk.f32.gmra.mxu1 %vm222_vm1, %v359_v21 }
  0xa0   : > { %v319_v39 = vpop.f32.mrf.mxu2 }
  0xa1   : > { %350 = vst.msk [vmem:[%s1548_s7 + $0x48] sm:$0xff] %vm340_vm2, %v319_v39 }
  0xa3   : > { %v298_v40 = vpop.f32.mrf.mxu0 }
  0xa4   : > { %343 = vst.msk [vmem:[%s1548_s7 + $0x10] sm:$0xff] %vm340_vm2, %v298_v40 }
  0xa5   : > { %1077 = vmatmul.msk.f32.gmra.mxu3 %vm222_vm1, %v368_v24  ;;  %1069 = vmatmul.msk.f32.gmra.mxu1 %vm222_vm1, %v360_v25 }
  0xa8   : > { %v322_v41 = vpop.f32.mrf.mxu2 }
  0xa9   : > { %351 = vst.msk [vmem:[%s1548_s7 + $0x50] sm:$0xff] %vm340_vm2, %v322_v41 }
  0xab   : > { %v301_v42 = vpop.f32.mrf.mxu0 }
  0xac   : > { %344 = vst.msk [vmem:[%s1548_s7 + $0x18] sm:$0xff] %vm340_vm2, %v301_v42 }
  0xad   : > { %1078 = vmatmul.msk.f32.gmra.mxu3 %vm222_vm1, %v369_v28  ;;  %1070 = vmatmul.msk.f32.gmra.mxu1 %vm222_vm1, %v361_v29 }
  0xb0   : > { %v325_v43 = vpop.f32.mrf.mxu2 }
  0xb1   : > { %352 = vst.msk [vmem:[%s1548_s7 + $0x58] sm:$0xff] %vm340_vm2, %v325_v43 }
  0xb3   : > { %v304_v45 = vpop.f32.mrf.mxu0 }
  0xb4   : > { %345 = vst.msk [vmem:[%s1548_s7 + $0x20] sm:$0xff] %vm340_vm2, %v304_v45 }
  0xb5   : > { %1079 = vmatmul.msk.f32.gmra.mxu3 %vm222_vm1, %v370_v30  ;;  %1071 = vmatmul.msk.f32.gmra.mxu1 %vm222_vm1, %v362_v31 }
  0xb8   : > { %v328_v47 = vpop.f32.mrf.mxu2 }
  0xb9   : > { %353 = vst.msk [vmem:[%s1548_s7 + $0x60] sm:$0xff] %vm340_vm2, %v328_v47 }
  0xbb   : > { %v307_v49 = vpop.f32.mrf.mxu0 }
  0xbc   : > { %346 = vst.msk [vmem:[%s1548_s7 + $0x28] sm:$0xff] %vm340_vm2, %v307_v49 }
  0xbd   : > { %1080 = vmatmul.msk.f32.gmra.mxu3 %vm222_vm1, %v371_v32  ;;  %1072 = vmatmul.msk.f32.gmra.mxu1 %vm222_vm1, %v363_v33 }
  0xc0   : > { %v331_v51 = vpop.f32.mrf.mxu2 }
  0xc1   : > { %354 = vst.msk [vmem:[%s1548_s7 + $0x68] sm:$0xff] %vm340_vm2, %v331_v51 }
  0xc3   : > { %v310_v53 = vpop.f32.mrf.mxu0 }
  0xc4   : > { %347 = vst.msk [vmem:[%s1548_s7 + $0x30] sm:$0xff] %vm340_vm2, %v310_v53 }
  0xc5   : > { %1081 = vmatmul.msk.f32.gmra.mxu3 %vm222_vm1, %v372_v34  ;;  %1073 = vmatmul.msk.f32.gmra.mxu1 %vm222_vm1, %v364_v35 }
  0xc8   : > { %v334_v55 = vpop.f32.mrf.mxu2 }
  0xc9   : > { %355 = vst.msk [vmem:[%s1548_s7 + $0x70] sm:$0xff] %vm340_vm2, %v334_v55 }
  0xcb   : > { %v313_v57 = vpop.f32.mrf.mxu0 }
  0xcc   : > { %348 = vst.msk [vmem:[%s1548_s7 + $0x38] sm:$0xff] %vm340_vm2, %v313_v57 }
  0xd0   : > { %v337_v59 = vpop.f32.mrf.mxu2 }
  0xd1   : > { %356 = vst.msk [vmem:[%s1548_s7 + $0x78] sm:$0xff] %vm340_vm2, %v337_v59 }
 0x10a   : > { %v446_v44 = vpop.f32.mrf.mxu1 }
 0x10b   : > { %495 = vst.msk [vmem:[%s1566_s8] sm:$0xff] %vm494_vm3, %v446_v44 }
 0x110   : > { %v470_v46 = vpop.f32.mrf.mxu3 }
 0x111   : > { %503 = vst.msk [vmem:[%s1566_s8 + $0x40] sm:$0xff] %vm494_vm3, %v470_v46 }
 0x112   : > { %v449_v48 = vpop.f32.mrf.mxu1 }
 0x113   : > { %496 = vst.msk [vmem:[%s1566_s8 + $0x8] sm:$0xff] %vm494_vm3, %v449_v48 }
 0x118   : > { %v473_v50 = vpop.f32.mrf.mxu3 }
 0x119   : > { %504 = vst.msk [vmem:[%s1566_s8 + $0x48] sm:$0xff] %vm494_vm3, %v473_v50 }
 0x11a   : > { %v452_v52 = vpop.f32.mrf.mxu1 }
 0x11b   : > { %497 = vst.msk [vmem:[%s1566_s8 + $0x10] sm:$0xff] %vm494_vm3, %v452_v52 }
 0x120   : > { %v476_v54 = vpop.f32.mrf.mxu3 }
 0x121   : > { %505 = vst.msk [vmem:[%s1566_s8 + $0x50] sm:$0xff] %vm494_vm3, %v476_v54 }
 0x122   : > { %v455_v56 = vpop.f32.mrf.mxu1 }
 0x123   : > { %498 = vst.msk [vmem:[%s1566_s8 + $0x18] sm:$0xff] %vm494_vm3, %v455_v56 }
 0x128   : > { %v479_v58 = vpop.f32.mrf.mxu3 }
 0x129   : > { %506 = vst.msk [vmem:[%s1566_s8 + $0x58] sm:$0xff] %vm494_vm3, %v479_v58 }
 0x12a   : > { %v458_v60 = vpop.f32.mrf.mxu1 }
 0x12b   : > { %499 = vst.msk [vmem:[%s1566_s8 + $0x20] sm:$0xff] %vm494_vm3, %v458_v60 }
 0x130   : > { %v482_v61 = vpop.f32.mrf.mxu3 }
 0x131   : > { %507 = vst.msk [vmem:[%s1566_s8 + $0x60] sm:$0xff] %vm494_vm3, %v482_v61 }
 0x132   : > { %v461_v62 = vpop.f32.mrf.mxu1 }
 0x133   : > { %500 = vst.msk [vmem:[%s1566_s8 + $0x28] sm:$0xff] %vm494_vm3, %v461_v62 }
 0x138   : > { %v485_v63 = vpop.f32.mrf.mxu3 }
 0x139   : > { %508 = vst.msk [vmem:[%s1566_s8 + $0x68] sm:$0xff] %vm494_vm3, %v485_v63 }
 0x13a   : > { %v464_v0 = vpop.f32.mrf.mxu1 }
 0x13b   : > { %501 = vst.msk [vmem:[%s1566_s8 + $0x30] sm:$0xff] %vm494_vm3, %v464_v0 }
 0x140   : > { %v488_v1 = vpop.f32.mrf.mxu3 }
 0x141   : > { %509 = vst.msk [vmem:[%s1566_s8 + $0x70] sm:$0xff] %vm494_vm3, %v488_v1 }
 0x142   : > { %v467_v2 = vpop.f32.mrf.mxu1 }
 0x143   : > { %502 = vst.msk [vmem:[%s1566_s8 + $0x38] sm:$0xff] %vm494_vm3, %v467_v2 }
 0x145   : > { %521 = sbr.rel (!%p1475_p4) target bundleno = 378 (0x17a), region = 32 }
 0x148   : > { %v491_v3 = vpop.f32.mrf.mxu3 }
 0x149   : > { %510 = vst.msk [vmem:[%s1566_s8 + $0x78] sm:$0xff] %vm494_vm3, %v491_v3 }
 0x14a   : > { %s1833_s9 = smov (!%p524_p8, %s523_s9), 16 }
 0x14b   : > { %s1085_s17 = sshll.u32 %s1833_s9, 3 }
 0x14c   : > { %p1088_p9 = scmp.eq.s32.totalorder %s1085_s17, 0 }
 0x14d   : > { %s1629_s18 = sshrl.u32 (!%p1088_p9), %s1833_s9, 4 }
 0x14e   : > { %532 = sbr.rel (%p1088_p9) target bundleno = 378 (0x17a), region = 36  ;;  %p1089_p10 = scmp.le.s32.totalorder (!%p1088_p9), %s1629_s18, 0 }
 0x153   : > { %959 = sbr.rel (%p1089_p10) target bundleno = 361 (0x169), region = 184  ;;  %s1819_s21 = smov (!%p1089_p10), %s1623_s14 }
 0x154   : > { %s1820_s22 = smov (!%p1089_p10), %s1548_s7  ;;  %s1638_s23 = smov (!%p1089_p10), 0  }
 0x155   : > { %s1640_s24 = smov (!%p1089_p10), 0  }
 0x158 LB: >> { %v625_v4 = vld [vmem:[%s1371_s22] sm:$0xff]  ;;  %v627_v5 = vld [vmem:[%s1371_s22 + $0x8] sm:$0xff]  ;;  %v629_v6 = vld [vmem:[%s1371_s22 + $0x10] sm:$0xff]  ;;  %s657_s25 = sadd.s32 1, %s1375_s23  ;;  %s619_s24 = sadd.s32 1, %s1379_s24   ;;  %s1379_s24 = sphi %s1640_s24, %s619_s24   ;;  %s1375_s23 = sphi %s1638_s23, %s1823_s23   ;;  %s1371_s22 = sphi %s1820_s22, %s1822_s22   ;;  %s1367_s21 = sphi %s1819_s21, %s1821_s21  }
 0x159   : >> { %626 = vst [vmem:[%s1367_s21] sm:$0xff] %v625_v4  ;;  %v631_v7 = vld [vmem:[%s1371_s22 + $0x18] sm:$0xff]  ;;  %p658_p11 = scmp.ge.s32.totalorder %s657_s25, %s1629_s18  ;;  %v633_v8 = vld [vmem:[%s1371_s22 + $0x20] sm:$0xff]  ;;  %v635_v9 = vld [vmem:[%s1371_s22 + $0x28] sm:$0xff]  ;;  %p618_p12 = scmp.ge.s32.totalorder %s619_s24, %s1629_s18 }
 0x15a   : >> { %628 = vst [vmem:[%s1367_s21 + $0x8] sm:$0xff] %v627_v5  ;;  %v637_v10 = vld [vmem:[%s1371_s22 + $0x30] sm:$0xff]  ;;  %v639_v11 = vld [vmem:[%s1371_s22 + $0x38] sm:$0xff]  ;;  %v641_v12 = vld [vmem:[%s1371_s22 + $0x40] sm:$0xff] }
 0x15b   : >> { %630 = vst [vmem:[%s1367_s21 + $0x10] sm:$0xff] %v629_v6  ;;  %s1835_s25 = smov (%p658_p11, %s657_s25), 0  ;;  %v643_v13 = vld [vmem:[%s1371_s22 + $0x48] sm:$0xff]  ;;  %v645_v14 = vld [vmem:[%s1371_s22 + $0x50] sm:$0xff]  ;;  %v647_v15 = vld [vmem:[%s1371_s22 + $0x58] sm:$0xff] }
 0x15c   : >> { %632 = vst [vmem:[%s1367_s21 + $0x18] sm:$0xff] %v631_v7  ;;  %s1090_s27 = sshll.u32 %s1835_s25, 7  ;;  %v649_v16 = vld [vmem:[%s1371_s22 + $0x60] sm:$0xff]  ;;  %v651_v17 = vld [vmem:[%s1371_s22 + $0x68] sm:$0xff]  ;;  %v653_v18 = vld [vmem:[%s1371_s22 + $0x70] sm:$0xff]  ;;  %s1823_s23 = smov %s1835_s25 }
 0x15d   : >> { %634 = vst [vmem:[%s1367_s21 + $0x20] sm:$0xff] %v633_v8  ;;  %s662_s28 = scalar_lea.vmem %s1548_s7, %s1090_s27 [#allocation2]   ;;  %s663_s29 = scalar_lea.vmem %s1623_s14, %s1090_s27   ;;  %v655_v19 = vld [vmem:[%s1371_s22 + $0x78] sm:$0xff] }
 0x15e   : >> { %636 = vst [vmem:[%s1367_s21 + $0x28] sm:$0xff] %v635_v9  ;;  %s1822_s22 = smov %s662_s28 }
 0x15f   : >> { %638 = vst [vmem:[%s1367_s21 + $0x30] sm:$0xff] %v637_v10 }
 0x160   : >> { %640 = vst [vmem:[%s1367_s21 + $0x38] sm:$0xff] %v639_v11 }
 0x161   : >> { %642 = vst [vmem:[%s1367_s21 + $0x40] sm:$0xff] %v641_v12 }
 0x162   : >> { %644 = vst [vmem:[%s1367_s21 + $0x48] sm:$0xff] %v643_v13 }
 0x163   : >> { %646 = vst [vmem:[%s1367_s21 + $0x50] sm:$0xff] %v645_v14 }
 0x164   : >> { %648 = vst [vmem:[%s1367_s21 + $0x58] sm:$0xff] %v647_v15  ;;  %621 = sbr.rel (!%p618_p12) target bundleno = 344 (0x158), region = 190 }
 0x165   : >> { %650 = vst [vmem:[%s1367_s21 + $0x60] sm:$0xff] %v649_v16 }
 0x166   : >> { %652 = vst [vmem:[%s1367_s21 + $0x68] sm:$0xff] %v651_v17 }
 0x167   : >> { %654 = vst [vmem:[%s1367_s21 + $0x70] sm:$0xff] %v653_v18 }
 0x168   : >> { %656 = vst [vmem:[%s1367_s21 + $0x78] sm:$0xff] %v655_v19  ;;  %s1821_s21 = smov %s663_s29 }
 0x169 PF: > { %s1702_s30 = sand.u32 15, %s1833_s9   ;;  %s1115_s4 = sshll.u32 %s1629_s18, 7 }
 0x16a   : > { %s668_s5 = scalar_lea.vmem %s1548_s7, %s1115_s4 [#allocation2]   ;;  %s670_s6 = scalar_lea.vmem %s1623_s14, %s1115_s4  }
 0x16b   : > { %p1095_p13 = scmp.le.s32.totalorder %s1702_s30, 0 }
 0x16c   : > { %s1381_s10 = smov (!%p1095_p13), %s670_s6   ;;  %s1385_s11 = smov (!%p1095_p13), %s668_s5  }
 0x16d   : > { %973 = sbr.rel (%p1095_p13) target bundleno = 378 (0x17a), region = 195  ;;  %s1389_s12 = smov (!%p1095_p13), 0  }
 0x16e   : > { %s1393_s17 = smov (!%p1095_p13), 0  }
 0x172 LB: >> { %v680_v20 = vld [vmem:[%s1387_s11] sm:$0xff]  ;;  %s682_s9 = sadd.s32 1, %s1391_s12  ;;  %s674_s17 = sadd.s32 1, %s1395_s17   ;;  %s1395_s17 = sphi %s1393_s17, %s674_s17   ;;  %s1391_s12 = sphi %s1389_s12, %s1390_s12   ;;  %s1387_s11 = sphi %s1385_s11, %s687_s11   ;;  %s1383_s10 = sphi %s1381_s10, %s688_s10  }
 0x173   : >> { %681 = vst [vmem:[%s1383_s10] sm:$0xff] %v680_v20  ;;  %p683_p0 = scmp.ge.s32.totalorder %s682_s9, %s1702_s30  ;;  %p673_p1 = scmp.ge.s32.totalorder %s674_s17, %s1702_s30 }
 0x175   : >> { %s1837_s9 = smov (%p683_p0, %s682_s9), 0  ;;  %676 = sbr.rel (!%p673_p1) target bundleno = 370 (0x172), region = 201 }
 0x176   : >> { %s1096_s7 = sshll.u32 %s1837_s9, 3  ;;  %s1390_s12 = smov %s1837_s9  }
 0x177   : >> { %s687_s11 = scalar_lea.vmem %s668_s5, %s1096_s7 [#allocation2]   ;;  %s688_s10 = scalar_lea.vmem %s670_s6, %s1096_s7  }
 0x17a PF: > { %694 = sbr.rel (!%p1475_p4) target bundleno = 431 (0x1af), region = 84  ;;  %s696_s14 = ssub.s32 (%p1475_p4), 125, %s1486_s26 }
 0x17b   : > { %s1117_s18 = sshll.u32 (%p1475_p4), %s1463_s15, 7  ;;  %p697_p2 = scmp.lt.s32.totalorder (%p1475_p4), %s696_s14, 16 }
 0x17c   : > { %s1717_s23 = scalar_lea.vmem (%p1475_p4), %s1817_s3, %s1117_s18  }
 0x17f   : > { %s1839_s14 = smov (!%p697_p2, %s696_s14), 16 }
 0x180   : > { %s1099_s24 = sshll.u32 %s1839_s14, 3 }
 0x181   : > { %p1102_p3 = scmp.eq.s32.totalorder %s1099_s24, 0 }
 0x182   : > { %s1723_s25 = sshrl.u32 (!%p1102_p3), %s1839_s14, 4 }
 0x183   : > { %705 = sbr.rel (%p1102_p3) target bundleno = 431 (0x1af), region = 88  ;;  %p1103_p4 = scmp.le.s32.totalorder (!%p1102_p3), %s1723_s25, 0 }
 0x188   : > { %987 = sbr.rel (%p1103_p4) target bundleno = 414 (0x19e), region = 206  ;;  %s1824_s15 = smov (!%p1103_p4), %s1717_s23 }
 0x189   : > { %s1825_s20 = smov (!%p1103_p4), %s1566_s8  ;;  %s1732_s26 = smov (!%p1103_p4), 0  }
 0x18a   : > { %s1734_s27 = smov (!%p1103_p4), 0  }
 0x18d LB: >> { %v798_v21 = vld [vmem:[%s1403_s20] sm:$0xff]  ;;  %v800_v22 = vld [vmem:[%s1403_s20 + $0x8] sm:$0xff]  ;;  %v802_v23 = vld [vmem:[%s1403_s20 + $0x10] sm:$0xff]  ;;  %s830_s28 = sadd.s32 1, %s1407_s26  ;;  %s792_s27 = sadd.s32 1, %s1411_s27   ;;  %s1411_s27 = sphi %s1734_s27, %s792_s27   ;;  %s1407_s26 = sphi %s1732_s26, %s1828_s26   ;;  %s1403_s20 = sphi %s1825_s20, %s1827_s20   ;;  %s1399_s15 = sphi %s1824_s15, %s1826_s15  }
 0x18e   : >> { %799 = vst [vmem:[%s1399_s15] sm:$0xff] %v798_v21  ;;  %v804_v24 = vld [vmem:[%s1403_s20 + $0x18] sm:$0xff]  ;;  %p831_p5 = scmp.ge.s32.totalorder %s830_s28, %s1723_s25  ;;  %v806_v25 = vld [vmem:[%s1403_s20 + $0x20] sm:$0xff]  ;;  %v808_v26 = vld [vmem:[%s1403_s20 + $0x28] sm:$0xff]  ;;  %p791_p6 = scmp.ge.s32.totalorder %s792_s27, %s1723_s25 }
 0x18f   : >> { %801 = vst [vmem:[%s1399_s15 + $0x8] sm:$0xff] %v800_v22  ;;  %v810_v27 = vld [vmem:[%s1403_s20 + $0x30] sm:$0xff]  ;;  %v812_v28 = vld [vmem:[%s1403_s20 + $0x38] sm:$0xff]  ;;  %v814_v29 = vld [vmem:[%s1403_s20 + $0x40] sm:$0xff] }
 0x190   : >> { %803 = vst [vmem:[%s1399_s15 + $0x10] sm:$0xff] %v802_v23  ;;  %s1841_s28 = smov (%p831_p5, %s830_s28), 0  ;;  %v816_v30 = vld [vmem:[%s1403_s20 + $0x48] sm:$0xff]  ;;  %v818_v31 = vld [vmem:[%s1403_s20 + $0x50] sm:$0xff]  ;;  %v820_v32 = vld [vmem:[%s1403_s20 + $0x58] sm:$0xff] }
 0x191   : >> { %805 = vst [vmem:[%s1399_s15 + $0x18] sm:$0xff] %v804_v24  ;;  %s1104_s29 = sshll.u32 %s1841_s28, 7  ;;  %v822_v33 = vld [vmem:[%s1403_s20 + $0x60] sm:$0xff]  ;;  %v824_v34 = vld [vmem:[%s1403_s20 + $0x68] sm:$0xff]  ;;  %v826_v35 = vld [vmem:[%s1403_s20 + $0x70] sm:$0xff]  ;;  %s1828_s26 = smov %s1841_s28 }
 0x192   : >> { %807 = vst [vmem:[%s1399_s15 + $0x20] sm:$0xff] %v806_v25  ;;  %s835_s30 = scalar_lea.vmem %s1566_s8, %s1104_s29 [#allocation3]   ;;  %s836_s4 = scalar_lea.vmem %s1717_s23, %s1104_s29   ;;  %v828_v36 = vld [vmem:[%s1403_s20 + $0x78] sm:$0xff] }
 0x193   : >> { %809 = vst [vmem:[%s1399_s15 + $0x28] sm:$0xff] %v808_v26  ;;  %s1827_s20 = smov %s835_s30 }
 0x194   : >> { %811 = vst [vmem:[%s1399_s15 + $0x30] sm:$0xff] %v810_v27 }
 0x195   : >> { %813 = vst [vmem:[%s1399_s15 + $0x38] sm:$0xff] %v812_v28 }
 0x196   : >> { %815 = vst [vmem:[%s1399_s15 + $0x40] sm:$0xff] %v814_v29 }
 0x197   : >> { %817 = vst [vmem:[%s1399_s15 + $0x48] sm:$0xff] %v816_v30 }
 0x198   : >> { %819 = vst [vmem:[%s1399_s15 + $0x50] sm:$0xff] %v818_v31 }
 0x199   : >> { %821 = vst [vmem:[%s1399_s15 + $0x58] sm:$0xff] %v820_v32  ;;  %794 = sbr.rel (!%p791_p6) target bundleno = 397 (0x18d), region = 212 }
 0x19a   : >> { %823 = vst [vmem:[%s1399_s15 + $0x60] sm:$0xff] %v822_v33 }
 0x19b   : >> { %825 = vst [vmem:[%s1399_s15 + $0x68] sm:$0xff] %v824_v34 }
 0x19c   : >> { %827 = vst [vmem:[%s1399_s15 + $0x70] sm:$0xff] %v826_v35 }
 0x19d   : >> { %829 = vst [vmem:[%s1399_s15 + $0x78] sm:$0xff] %v828_v36  ;;  %s1826_s15 = smov %s836_s4 }
 0x19e PF: > { %s1796_s5 = sand.u32 15, %s1839_s14   ;;  %s1118_s6 = sshll.u32 %s1723_s25, 7 }
 0x19f   : > { %s841_s10 = scalar_lea.vmem %s1566_s8, %s1118_s6 [#allocation3]   ;;  %s843_s11 = scalar_lea.vmem %s1717_s23, %s1118_s6  }
 0x1a0   : > { %p1109_p7 = scmp.le.s32.totalorder %s1796_s5, 0 }
 0x1a1   : > { %s1413_s12 = smov (!%p1109_p7), %s843_s11   ;;  %s1417_s17 = smov (!%p1109_p7), %s841_s10  }
 0x1a2   : > { %1001 = sbr.rel (%p1109_p7) target bundleno = 431 (0x1af), region = 217  ;;  %s1421_s9 = smov (!%p1109_p7), 0  }
 0x1a3   : > { %s1425_s7 = smov (!%p1109_p7), 0  }
 0x1a7 LB: >> { %v853_v37 = vld [vmem:[%s1419_s17] sm:$0xff]  ;;  %s855_s14 = sadd.s32 1, %s1423_s9  ;;  %s847_s7 = sadd.s32 1, %s1427_s7   ;;  %s1427_s7 = sphi %s1425_s7, %s847_s7   ;;  %s1423_s9 = sphi %s1421_s9, %s1422_s9   ;;  %s1419_s17 = sphi %s1417_s17, %s860_s17   ;;  %s1415_s12 = sphi %s1413_s12, %s861_s12  }
 0x1a8   : >> { %854 = vst [vmem:[%s1415_s12] sm:$0xff] %v853_v37  ;;  %p856_p8 = scmp.ge.s32.totalorder %s855_s14, %s1796_s5  ;;  %p846_p9 = scmp.ge.s32.totalorder %s847_s7, %s1796_s5 }
 0x1aa   : >> { %s1843_s14 = smov (%p856_p8, %s855_s14), 0  ;;  %849 = sbr.rel (!%p846_p9) target bundleno = 423 (0x1a7), region = 223 }
 0x1ab   : >> { %s1110_s8 = sshll.u32 %s1843_s14, 3  ;;  %s1422_s9 = smov %s1843_s14  }
 0x1ac   : >> { %s860_s17 = scalar_lea.vmem %s841_s10, %s1110_s8 [#allocation3]   ;;  %s861_s12 = scalar_lea.vmem %s843_s11, %s1110_s8  }
 0x1af PF: > { %p11_p10 = scmp.ge.s32.totalorder %s1465_s16, 10   ;;  %s1829_s12 = smov %s1359_s13 }
 0x1b0   : > { %s1830_s13 = smov %s1473_s19  ;;  %s1831_s14 = smov %s1465_s16 }
 0x1b1   :  { %13 = sbr.rel (!%p11_p10) target bundleno = 2 (0x2), region = 234 }

</bundles_post_ra>
